<compile_context>
chip_gen: v5e
topology: v5e:2x2
jax: 0.10.0
libtpu: 0.0.40
codegen_flags: <defaults>
</compile_context>

<pallas_src>
import functools

import jax
import jax.numpy as jnp
from jax import lax
from jax.experimental import pallas as pl
from jax.experimental.pallas import tpu as pltpu


def _round_up(x, m):
    return ((x + m - 1) // m) * m


def _pick_tile_n(n_rows, n_classes, itemsize):
    """Largest row tile that keeps the f32 working set ~2 MiB.

    With double buffering plus a few f32 temporaries this stays far below the
    32 MiB default scoped-VMEM limit (and v7x's 64 MiB physical VMEM), while
    being large enough to amortize the ~0.35 us per-grid-step overhead.
    """
    del itemsize  # temporaries are f32 regardless of input dtype
    budget_bytes = 2 * 1024 * 1024
    t = max(8, min(1024, budget_bytes // max(1, n_classes * 4)))
    t = (t // 8) * 8                      # sublane multiple
    t = min(t, _round_up(n_rows, 8))      # never bigger than (rounded) problem
    return max(t, 8)


def _ce_partial_kernel(logits_ref, labels_ref, weight_ref, out_ref, *,
                       n_valid_rows, tile_n, row_axis, unit_weight):
    """One row-tile of weighted cross-entropy.

    logits_ref : (TILE_N, C)  native dtype, cast to f32 in-kernel
    labels_ref : (TILE_N, 1)  int32
    weight_ref : (1, C)       f32 (ignored when unit_weight)
    out_ref    : (1, 128)     f32; lane 0 = partial numerator, lane 1 = partial
                              denominator, other lanes zero.
    """
    x = logits_ref[...].astype(jnp.float32)          # (T, C)
    y = labels_ref[...].astype(jnp.int32)            # (T, 1)
    t, c = x.shape

    # Mask rows past the true row count (ragged last tile reads garbage).
    row_start = pl.program_id(row_axis) * tile_n
    row_ids = row_start + lax.broadcasted_iota(jnp.int32, (t, 1), 0)
    valid = row_ids < n_valid_rows                    # (T, 1) bool
    x = jnp.where(valid, x, 0.0)                      # keep NaNs out of the math

    # Numerically stable logsumexp per row.
    m = jnp.max(x, axis=-1, keepdims=True)                              # (T, 1)
    lse = jnp.log(jnp.sum(jnp.exp(x - m), axis=-1, keepdims=True)) + m  # (T, 1)

    # One-hot select of the target logit (and target weight if needed).
    class_ids = lax.broadcasted_iota(jnp.int32, (t, c), 1)
    onehot = class_ids == y                                              # (T, C)
    logit_y = jnp.sum(jnp.where(onehot, x, 0.0), axis=-1, keepdims=True)  # (T, 1)
    nll = lse - logit_y                                                   # (T, 1)

    if unit_weight:
        # weight == all ones: denominator is simply the number of valid rows.
        num = jnp.sum(jnp.where(valid, nll, 0.0))
        den = jnp.sum(valid.astype(jnp.float32))
    else:
        w = weight_ref[...].astype(jnp.float32)       # (1, C), broadcasts in where
        w_y = jnp.sum(jnp.where(onehot, w, 0.0), axis=-1, keepdims=True)
        w_y = jnp.where(valid, w_y, 0.0)
        num = jnp.sum(w_y * nll)
        den = jnp.sum(w_y)

    # Lane-dense (1, 128) partial: [num, den, 0, ..., 0].
    lane = lax.broadcasted_iota(jnp.int32, (1, 128), 1)
    out_ref[...] = jnp.where(lane == 0, num, jnp.where(lane == 1, den, 0.0))


@functools.partial(jax.jit, static_argnames=("unit_weight",))
def _weighted_ce_flat(logits, labels, weight, *, unit_weight):
    """Weighted-mean CE over a flat (N, C) logits / (N,) labels problem."""
    n, c = logits.shape
    tile_n = _pick_tile_n(n, c, logits.dtype.itemsize)
    n_tiles = pl.cdiv(n, tile_n)

    labels2 = labels.reshape(n, 1).astype(jnp.int32)
    weight2 = weight.reshape(1, c).astype(jnp.float32)

    kernel = functools.partial(
        _ce_partial_kernel,
        n_valid_rows=n, tile_n=tile_n, row_axis=0, unit_weight=unit_weight)

    partials = pl.pallas_call(
        kernel,
        out_shape=jax.ShapeDtypeStruct((1, n_tiles * 128), jnp.float32),
        grid=(n_tiles,),
        in_specs=[
            pl.BlockSpec((tile_n, c), lambda i: (i, 0)),   # logits tile
            pl.BlockSpec((tile_n, 1), lambda i: (i, 0)),   # labels tile
            pl.BlockSpec((1, c), lambda i: (0, 0)),        # weights (pinned)
        ],
        out_specs=pl.BlockSpec((1, 128), lambda i: (0, i)),
        compiler_params=pltpu.CompilerParams(
            dimension_semantics=("parallel",)),
        cost_estimate=pl.CostEstimate(
            flops=6 * n * c,
            transcendentals=n * c + n,
            bytes_accessed=n * c * logits.dtype.itemsize + n * 4 + c * 4
                           + n_tiles * 128 * 4),
    )(logits, labels2, weight2)

    p = partials.reshape(n_tiles, 128)
    return jnp.sum(p[:, 0]) / jnp.sum(p[:, 1])


@functools.partial(jax.jit, static_argnames=("unit_weight",))
def _weighted_ce_per_sample(logits, labels, weight, *, unit_weight):
    """Per-sample weighted CE over stacked (S, L, C) logits; mean over samples."""
    s, l, c = logits.shape
    tile_n = _pick_tile_n(l, c, logits.dtype.itemsize)
    n_tiles = pl.cdiv(l, tile_n)

    labels3 = labels.reshape(s, l, 1).astype(jnp.int32)
    weight2 = weight.reshape(1, c).astype(jnp.float32)

    kernel = functools.partial(
        _ce_partial_kernel,
        n_valid_rows=l, tile_n=tile_n, row_axis=1, unit_weight=unit_weight)

    partials = pl.pallas_call(
        kernel,
        out_shape=jax.ShapeDtypeStruct((s, 1, n_tiles * 128), jnp.float32),
        grid=(s, n_tiles),
        in_specs=[
            pl.BlockSpec((None, tile_n, c), lambda si, ti: (si, ti, 0)),
            pl.BlockSpec((None, tile_n, 1), lambda si, ti: (si, ti, 0)),
            pl.BlockSpec((1, c), lambda si, ti: (0, 0)),
        ],
        out_specs=pl.BlockSpec((None, 1, 128), lambda si, ti: (si, 0, ti)),
        compiler_params=pltpu.CompilerParams(
            dimension_semantics=("parallel", "parallel")),
        cost_estimate=pl.CostEstimate(
            flops=6 * s * l * c,
            transcendentals=s * l * c + s * l,
            bytes_accessed=s * l * c * logits.dtype.itemsize + s * l * 4 + c * 4
                           + s * n_tiles * 128 * 4),
    )(logits, labels3, weight2)

    p = partials.reshape(s, n_tiles, 128)
    num = jnp.sum(p[:, :, 0], axis=1)
    den = jnp.sum(p[:, :, 1], axis=1)
    return jnp.mean(num / den)


def _is_unit_weight(weight):
    if weight is None:
        return True
    if isinstance(weight, (list, tuple)):
        try:
            return all(float(v) == 1.0 for v in weight)
        except (TypeError, ValueError):
            return False
    return False


class MultiPredLoss:
    """JAX/Pallas port of the PyTorch MultiPredLoss module."""

    def __init__(self, weight=None):
        self.weight = weight

    def __call__(self, data, label):
        is_tensor = not isinstance(data, (list, tuple))
        if self.weight is None:
            # Mirrors the PyTorch module's lazy all-ones initialization
            # (note: this mutates state, just like the original module).
            num_classes = int(data.shape[-1]) if is_tensor else int(data[0].shape[-1])
            self.weight = [1.0] * num_classes

        unit_weight = _is_unit_weight(self.weight)
        w = jnp.asarray(self.weight, dtype=jnp.float32)

        if is_tensor:
            # tensor path: flatten leading dims, single weighted CE
            logits = data.reshape(-1, data.shape[-1])
            labels = label.reshape(-1)
            return _weighted_ce_flat(logits, labels, w, unit_weight=unit_weight)

        # list path: per-sample CE, then unweighted mean over samples
        shapes = {tuple(x.shape) for x in data}
        if len(shapes) == 1:
            stacked = jnp.stack(list(data))     # (S, L, C)
            labs = jnp.stack(list(label))       # (S, L)
            return _weighted_ce_per_sample(stacked, labs, w,
                                           unit_weight=unit_weight)

        # ragged samples: fall back to one kernel call per sample
        losses = [
            _weighted_ce_flat(x.reshape(-1, x.shape[-1]), y.reshape(-1), w,
                              unit_weight=unit_weight)
            for x, y in zip(data, label)
        ]
        return jnp.mean(jnp.stack(losses))


if __name__ == "__main__":
    key = jax.random.PRNGKey(0)
    k1, k2, k3 = jax.random.split(key, 3)

    batch = 2            # sample_num
    n_labels = 8         # sample_label_num
    n_classes = 32       # class_pred_probability

    data = jax.random.normal(k1, (batch, n_labels, n_classes), dtype=jnp.float32)
    label = jax.random.randint(k2, (batch, n_labels), 0, n_classes, dtype=jnp.int32)

    # reference values (pure JAX)
    logits = data.reshape(-1, n_classes)
    labels = label.reshape(-1)
    lse = jax.scipy.special.logsumexp(logits, axis=-1)
    nll = lse - logits[jnp.arange(logits.shape[0]), labels]
    ref_unweighted = jnp.mean(nll)

    # --- tensor path, weight=None (unit-weight fast path) ---
    loss = MultiPredLoss()(data, label)
    jax.block_until_ready(loss)
    assert jnp.allclose(loss, ref_unweighted, atol=1e-5, rtol=1e-5), (loss, ref_unweighted)

    # --- tensor path, non-trivial class weights ---
    w = jax.random.uniform(k3, (n_classes,), minval=0.5, maxval=2.0, dtype=jnp.float32)
    loss_w = MultiPredLoss(weight=w)(data, label)
    jax.block_until_ready(loss_w)
    w_y = w[labels]
    ref_weighted = jnp.sum(w_y * nll) / jnp.sum(w_y)
    assert jnp.allclose(loss_w, ref_weighted, atol=1e-5, rtol=1e-5), (loss_w, ref_weighted)

    # --- list path (single batched kernel call over the sample axis) ---
    loss_list = MultiPredLoss()([data[0], data[1]], [label[0], label[1]])
    jax.block_until_ready(loss_list)
    # equal sample sizes + unit weights -> per-sample mean of means == flat mean
    assert jnp.allclose(loss_list, ref_unweighted, atol=1e-5, rtol=1e-5), (loss_list, ref_unweighted)

    print("KERNEL_OK")
</pallas_src>

<mosaic_0001>
module attributes {stable_mosaic.version = 11 : i64} {
  func.func @_ce_partial_kernel(%arg0: i32, %arg1: memref<16x32xf32, #tpu.memory_space<vmem>>, %arg2: memref<16x1xi32, #tpu.memory_space<vmem>>, %arg3: memref<1x32xf32, #tpu.memory_space<vmem>>, %arg4: memref<1x128xf32, #tpu.memory_space<vmem>>) attributes {dimension_semantics = [#tpu.dimension_semantics<parallel>], iteration_bounds = array<i64: 1>, scalar_prefetch = 0 : i64, scratch_operands = 0 : i64, tpu.core_type = #tpu.core_type<tc>, window_params = [{transform_indices = @transform_0, window_bounds = array<i64: 16, 32>}, {transform_indices = @transform_1, window_bounds = array<i64: 16, 1>}, {pipeline_mode = #tpu.pipeline_mode<synchronous>, transform_indices = @transform_2, window_bounds = array<i64: 1, 32>}, {transform_indices = @transform_3, window_bounds = array<i64: 1, 128>}]} {
    %c0 = arith.constant 0 : index
    %c0_0 = arith.constant 0 : index
    %0 = vector.load %arg1[%c0, %c0_0] : memref<16x32xf32, #tpu.memory_space<vmem>>, vector<16x32xf32>
    %c0_1 = arith.constant 0 : index
    %c0_2 = arith.constant 0 : index
    %1 = vector.load %arg2[%c0_1, %c0_2] : memref<16x1xi32, #tpu.memory_space<vmem>>, vector<16x1xi32>
    %c16_i32 = arith.constant 16 : i32
    %2 = arith.muli %arg0, %c16_i32 : i32
    %3 = tpu.iota {dimensions = array<i32: 0>} : vector<16x1xi32>
    %4 = vector.broadcast %2 : i32 to vector<16x1xi32>
    %5 = arith.addi %4, %3 : vector<16x1xi32>
    %c16_i32_3 = arith.constant 16 : i32
    %6 = vector.broadcast %c16_i32_3 : i32 to vector<16x1xi32>
    %7 = arith.cmpi slt, %5, %6 : vector<16x1xi32>
    %cst = arith.constant 0.000000e+00 : f32
    %8 = vector.shape_cast %7 : vector<16x1xi1> to vector<16x1xi1>
    %9 = vector.broadcast %8 : vector<16x1xi1> to vector<16x32xi1>
    %10 = vector.broadcast %cst : f32 to vector<16x32xf32>
    %11 = arith.select %9, %0, %10 : vector<16x32xi1>, vector<16x32xf32>
    %cst_4 = arith.constant dense<0xFF800000> : vector<16xf32>
    %12 = vector.multi_reduction <maximumf>, %11, %cst_4 [1] : vector<16x32xf32> to vector<16xf32>
    %13 = vector.shape_cast %12 : vector<16xf32> to vector<16x1xf32>
    %14 = vector.broadcast %13 : vector<16x1xf32> to vector<16x32xf32>
    %15 = arith.subf %11, %14 : vector<16x32xf32>
    %16 = math.exp %15 : vector<16x32xf32>
    %cst_5 = arith.constant dense<0.000000e+00> : vector<16xf32>
    %17 = vector.multi_reduction <add>, %16, %cst_5 [1] : vector<16x32xf32> to vector<16xf32>
    %18 = vector.shape_cast %17 : vector<16xf32> to vector<16x1xf32>
    %19 = math.log %18 : vector<16x1xf32>
    %20 = arith.addf %19, %13 : vector<16x1xf32>
    %21 = tpu.iota {dimensions = array<i32: 1>} : vector<16x32xi32>
    %22 = vector.broadcast %1 : vector<16x1xi32> to vector<16x32xi32>
    %23 = arith.cmpi eq, %21, %22 : vector<16x32xi32>
    %cst_6 = arith.constant 0.000000e+00 : f32
    %24 = vector.broadcast %cst_6 : f32 to vector<16x32xf32>
    %25 = arith.select %23, %11, %24 : vector<16x32xi1>, vector<16x32xf32>
    %cst_7 = arith.constant dense<0.000000e+00> : vector<16xf32>
    %26 = vector.multi_reduction <add>, %25, %cst_7 [1] : vector<16x32xf32> to vector<16xf32>
    %27 = vector.shape_cast %26 : vector<16xf32> to vector<16x1xf32>
    %28 = arith.subf %20, %27 : vector<16x1xf32>
    %cst_8 = arith.constant 0.000000e+00 : f32
    %29 = vector.broadcast %cst_8 : f32 to vector<16x1xf32>
    %30 = arith.select %7, %28, %29 : vector<16x1xi1>, vector<16x1xf32>
    %31 = vector.shape_cast %30 : vector<16x1xf32> to vector<1x16x1xf32>
    %cst_9 = arith.constant dense<0.000000e+00> : vector<1xf32>
    %32 = vector.multi_reduction <add>, %31, %cst_9 [1, 2] : vector<1x16x1xf32> to vector<1xf32>
    %33 = vector.shape_cast %32 : vector<1xf32> to vector<1x1x1xf32>
    %34 = vector.extract %33[0, 0, 0] : f32 from vector<1x1x1xf32>
    %35 = arith.extui %7 : vector<16x1xi1> to vector<16x1xi32>
    %36 = arith.sitofp %35 : vector<16x1xi32> to vector<16x1xf32>
    %37 = vector.shape_cast %36 : vector<16x1xf32> to vector<1x16x1xf32>
    %cst_10 = arith.constant dense<0.000000e+00> : vector<1xf32>
    %38 = vector.multi_reduction <add>, %37, %cst_10 [1, 2] : vector<1x16x1xf32> to vector<1xf32>
    %39 = vector.shape_cast %38 : vector<1xf32> to vector<1x1x1xf32>
    %40 = vector.extract %39[0, 0, 0] : f32 from vector<1x1x1xf32>
    %41 = tpu.iota {dimensions = array<i32: 1>} : vector<1x128xi32>
    %c0_i32 = arith.constant 0 : i32
    %42 = vector.broadcast %c0_i32 : i32 to vector<1x128xi32>
    %43 = arith.cmpi eq, %41, %42 : vector<1x128xi32>
    %c1_i32 = arith.constant 1 : i32
    %44 = vector.broadcast %c1_i32 : i32 to vector<1x128xi32>
    %45 = arith.cmpi eq, %41, %44 : vector<1x128xi32>
    %cst_11 = arith.constant 0.000000e+00 : f32
    %46 = vector.broadcast %40 : f32 to vector<1x128xf32>
    %47 = vector.broadcast %cst_11 : f32 to vector<1x128xf32>
    %48 = arith.select %45, %46, %47 : vector<1x128xi1>, vector<1x128xf32>
    %49 = vector.broadcast %34 : f32 to vector<1x128xf32>
    %50 = arith.select %43, %49, %48 : vector<1x128xi1>, vector<1x128xf32>
    %c0_12 = arith.constant 0 : index
    %c0_13 = arith.constant 0 : index
    %51 = vector.load %arg4[%c0_12, %c0_13] : memref<1x128xf32, #tpu.memory_space<vmem>>, vector<1x128xf32>
    tpu.vector_store %arg4[%c0_12, %c0_13], %50 {strides = array<i32>} : memref<1x128xf32, #tpu.memory_space<vmem>>, vector<1x128xf32>,
    return
  }
  func.func @transform_0(%arg0: i32) -> (i32, i32) {
    %c0_i32 = arith.constant 0 : i32
    %c0_i32_0 = arith.constant 0 : i32
    return %arg0, %c0_i32 : i32, i32
  }
  func.func @transform_1(%arg0: i32) -> (i32, i32) {
    %c0_i32 = arith.constant 0 : i32
    %c0_i32_0 = arith.constant 0 : i32
    return %arg0, %c0_i32 : i32, i32
  }
  func.func @transform_2(%arg0: i32) -> (i32, i32) {
    %c0_i32 = arith.constant 0 : i32
    %c0_i32_0 = arith.constant 0 : i32
    %c0_i32_1 = arith.constant 0 : i32
    return %c0_i32, %c0_i32_0 : i32, i32
  }
  func.func @transform_3(%arg0: i32) -> (i32, i32) {
    %c0_i32 = arith.constant 0 : i32
    %c0_i32_0 = arith.constant 0 : i32
    return %c0_i32, %arg0 : i32, i32
  }
}

</mosaic_0001>

<bundles_post_ra>
// kernel: _weighted_ce_flat.1
= control target key start
LH: loop header
LB: loop body
LE: loop exit
PB: predicated region body
PF: predicated region fallthrough
CT: control target
= control target key end

     0   :  { %vm33_vm0 = vcmask 261120   ;;  %v134_v1 = vmov 0   ;;  %v58_v7 = vlaneseq  ;;  %vm80_vm3 = vcmask 7168   ;;  %s186_s0 = inlined_call_operand.vmem [shape: f32[16,32], index: 0, kind: input, shape index: {}]   ;;  %s187_s1 = inlined_call_operand.vmem [shape: s32[16,1], index: 1, kind: input, shape index: {}]   ;;  %s188_s2 = inlined_call_operand.vmem [shape: f32[1,32], index: 2, kind: input, shape index: {}]   ;;  %s189_s3 = inlined_call_operand.vmem [shape: f32[1,128], index: 3, kind: output, shape index: {}]  }
   0x1   :  { %v14_v0 = vld [vmem:[%s186_s0] sm:$0xff]  ;;  %124 = vset.pattern.permute.xlu1 %v134_v1  ;;  %125 = vset.pattern.permute.xlu0 %v134_v1  ;;  %v15_v4 = vld [vmem:[%s186_s0 + $0x8] sm:$0xff]  ;;  %v135_v25 = vmov 0.0  }
   0x2   :  { %v16_v2 = vld [vmem:[%s187_s1] sm:$0xff]  ;;  %v34_v3 = vsel %vm33_vm0, %v14_v0, -inf  ;;  %v17_v5 = vld [vmem:[%s187_s1 + $0x8] sm:$0xff]  ;;  %v37_v6 = vsel %vm33_vm0, %v15_v4, -inf  ;;  %v170_v8 = vand.u32 127, %v58_v7  ;;  %v95_v26 = vsel %vm80_vm3, 1.0, %v135_v25 }
   0x3   :  { %61 = vperm.xlu1 %124, %v16_v2   ;;  %35 = vmax.xlane.f32.xlu0 %v34_v3  ;;  %v97_v27 = vadd.f32 %v95_v26, %v95_v26 }
   0x4   :  { %vm108_vm4 = vcmp.eq.s32.totalorder %v170_v8, 1  ;;  %vm107_vm5 = vcmp.eq.s32.totalorder %v170_v8, 0 }
   0xb   :  { %64 = vperm.xlu1 %124, %v17_v5   ;;  %38 = vmax.xlane.f32.xlu0 %v37_v6 }
  0x75   :  { %v62_v9 = vpop.permute.xlu1 %61 }
  0x76   :  { %vm66_vm1 = vcmp.eq.s32.totalorder %v170_v8, %v62_v9  ;;  %v36_v10 = vpop.xlane.xlu0 %35 }
  0x77   :  { %v68_v11 = vsel %vm66_vm1, %v14_v0, 0.0  ;;  %v40_v12 = vsub.f32 %v14_v0, %v36_v10 }
  0x78   :  { %v70_v13 = vsel %vm33_vm0, %v68_v11, 0.0 }
  0x79   :  { %71 = vadd.xlane.f32.xlu0 %v70_v13  ;;  %v42_v14 = vmul.f32 1.442695, %v40_v12 }
  0x7b   :  { %126 = vpow2.f32 %v42_v14 }
  0x7d   :  { %v65_v15 = vpop.permute.xlu1 %64 }
  0x7e   :  { %vm67_vm2 = vcmp.eq.s32.totalorder %v170_v8, %v65_v15  ;;  %v39_v16 = vpop.xlane.xlu0 %38 }
  0x7f   :  { %v69_v17 = vsel %vm67_vm2, %v15_v4, 0.0  ;;  %v41_v18 = vsub.f32 %v15_v4, %v39_v16 }
  0x80   :  { %v73_v19 = vsel %vm33_vm0, %v69_v17, 0.0 }
  0x81   :  { %74 = vadd.xlane.f32.xlu1 %v73_v19  ;;  %v127_v20 = vpop.eup %126  ;;  %v44_v21 = vmul.f32 1.442695, %v41_v18  ;;  %98 = vadd.xlane.f32.xlu0 %v97_v27 }
  0x82   :  { %v46_v22 = vsel %vm33_vm0, %v127_v20, 0.0 }
  0x83   :  { %128 = vpow2.f32 %v44_v21  ;;  %47 = vadd.xlane.f32.xlu2 %v46_v22 }
  0x89   :  { %v129_v23 = vpop.eup %128 }
  0x8a   :  { %v49_v24 = vsel %vm33_vm0, %v129_v23, 0.0 }
  0x8b   :  { %50 = vadd.xlane.f32.xlu2 %v49_v24 }
  0xec   :  { %v72_v34 = vpop.xlane.xlu0 %71 }
  0xf4   :  { %v75_v38 = vpop.xlane.xlu1 %74  ;;  %v99_v43 = vpop.xlane.xlu0 %98 }
  0xf5   :  { %v100_v44 = vrot.slane %v99_v43, 4 }
  0xf6   :  { %v48_v28 = vpop.xlane.xlu2 %47 }
  0xf7   :  { %130 = vlog2.f32 %v48_v28  ;;  %v101_v45 = vadd.f32 %v100_v44, %v99_v43 }
  0xf9   :  { %v102_v46 = vrot.slane %v101_v45, 2 }
  0xfb   :  { %v103_v50 = vadd.f32 %v102_v46, %v101_v45 }
  0xfd   :  { %v131_v29 = vpop.eup %130  ;;  %v104_v53 = vrot.slane %v103_v50, 1 }
  0xfe   :  { %v51_v30 = vpop.xlane.xlu2 %50  ;;  %v53_v31 = vmul.f32 0.6931472, %v131_v29 }
  0xff   :  { %132 = vlog2.f32 %v51_v30  ;;  %v105_v56 = vadd.f32 %v104_v53, %v103_v50 }
 0x100   :  { %v56_v32 = vadd.f32 %v53_v31, %v36_v10 }
 0x102   :  { %v76_v37 = vsub.f32 %v56_v32, %v72_v34 }
 0x104   :  { %v81_v40 = vsel %vm80_vm3, %v76_v37, 0.0 }
 0x105   :  { %v133_v33 = vpop.eup %132 }
 0x106   :  { %v55_v35 = vmul.f32 0.6931472, %v133_v33 }
 0x108   :  { %v57_v36 = vadd.f32 %v55_v35, %v39_v16 }
 0x10a   :  { %v77_v39 = vsub.f32 %v57_v36, %v75_v38 }
 0x10c   :  { %v82_v41 = vsel %vm80_vm3, %v77_v39, 0.0 }
 0x10d   :  { %v83_v42 = vadd.f32 %v82_v41, %v81_v40 }
 0x10f   :  { %84 = vadd.xlane.f32.xlu2 %v83_v42 }
 0x182   :  { %v85_v47 = vpop.xlane.xlu2 %84 }
 0x183   :  { %v86_v48 = vrot.slane %v85_v47, 4 }
 0x185   :  { %v87_v49 = vadd.f32 %v86_v48, %v85_v47 }
 0x187   :  { %v88_v51 = vrot.slane %v87_v49, 2 }
 0x189   :  { %v89_v52 = vadd.f32 %v88_v51, %v87_v49 }
 0x18b   :  { %v90_v54 = vrot.slane %v89_v52, 1 }
 0x18d   :  { %v91_v55 = vadd.f32 %v90_v54, %v89_v52 }
 0x18f   :  { %118 = vpush %v91_v55 }
 0x190   :  { %120 = vpush %v105_v56 }
 0x1c0   :  { %s119_s0 = spop %118 }
 0x1c1   :  { %v111_v57 = vstv %s119_s0  ;;  %s121_s1 = spop %120 }
 0x1c2   :  { %v109_v58 = vstv %s121_s1 }
 0x1c3   :  { %v110_v59 = vsel %vm108_vm4, %v109_v58, 0.0 }
 0x1c4   :  { %v112_v60 = vsel %vm107_vm5, %v111_v57, %v110_v59 }
 0x1c5   :  { %113 = vst [vmem:[%s189_s3] sm:$0x1] %v112_v60 }

</bundles_post_ra>
